<compile_context>
chip_gen: v7x
topology: tpu7x:2x2x1
jax: 0.10.0
libtpu: 0.0.40
codegen_flags: <defaults>
</compile_context>

<pallas_src>
import jax
import jax.numpy as jnp
from jax.experimental import pallas as pl
from jax.experimental.pallas import tpu as pltpu


def _round_up(n, m):
    return ((n + m - 1) // m) * m


def mlp_kernel(x_ref, w1_ref, b1_ref, w2_ref, b2_ref, w3_ref, b3_ref, o_ref):
    # x_ref: (1, TB)     batch on lanes
    # w1: (24, 1)  b1: (24, 1)
    # w2: (12, 24) b2: (12, 1)
    # w3: (3, 12)  b3: (3, 1)
    # o_ref: (3, TB)
    x = x_ref[...].astype(jnp.float32)                      # (1, TB)

    # fc1 + relu: K=1 matmul is just an outer product -> VPU broadcast-multiply.
    h1 = w1_ref[...] * x + b1_ref[...]                      # (24,1)*(1,TB)+(24,1) -> (24,TB)
    h1 = jnp.maximum(h1, 0.0)

    # fc2 + relu (MXU, f32 accumulate)
    h2 = jnp.dot(w2_ref[...], h1, preferred_element_type=jnp.float32) + b2_ref[...]
    h2 = jnp.maximum(h2, 0.0)                               # (12, TB)

    # fc3 (no activation)
    out = jnp.dot(w3_ref[...], h2, preferred_element_type=jnp.float32) + b3_ref[...]
    o_ref[...] = out.astype(o_ref.dtype)                    # (3, TB) lane-dense store


def policy_network_forward(x, params):
    """x: (B, 1) float32 -> (B, 3) float32. params in PyTorch (out,in)/(out,1) orientation."""
    w1, b1, w2, b2, w3, b3 = params
    B = x.shape[0]

    # Lane-aligned batch tile: multiple of 128, capped at 512 rows per grid step.
    TB = min(512, _round_up(B, 128))
    Bp = _round_up(B, TB)
    grid = (Bp // TB,)

    # Feature-major, lane-dense input: (1, Bp), zero-padded on the batch axis.
    xt = jnp.zeros((1, Bp), jnp.float32).at[0, :B].set(x[:, 0].astype(jnp.float32))

    # Batch-tiled specs for activations; constant index_maps keep params VMEM-resident.
    x_spec = pl.BlockSpec((1, TB), lambda i: (0, i))
    out_spec = pl.BlockSpec((3, TB), lambda i: (0, i))
    resident = lambda a: pl.BlockSpec(a.shape, lambda i: tuple(0 for _ in a.shape))

    out_t = pl.pallas_call(
        mlp_kernel,
        out_shape=jax.ShapeDtypeStruct((3, Bp), jnp.float32),
        grid=grid,
        in_specs=[x_spec, resident(w1), resident(b1),
                  resident(w2), resident(b2),
                  resident(w3), resident(b3)],
        out_specs=out_spec,
        compiler_params=pltpu.CompilerParams(
            dimension_semantics=("parallel",),      # shard batch tiles across TCs on v7x
        ),
    )(xt, w1, b1, w2, b2, w3, b3)

    # Back to PyTorch (B, 3) layout; drop batch padding.
    return out_t[:, :B].T


def init_params(key):
    """Deterministic init mimicking torch.nn.Linear (U(-1/sqrt(fan_in), +1/sqrt(fan_in))).
    Weights stored PyTorch-style as (out_features, in_features); biases as (out_features, 1)."""
    sizes = [(1, 24), (24, 12), (12, 3)]   # (fan_in, fan_out) per layer
    params = []
    for i, (fin, fout) in enumerate(sizes):
        kw, kb = jax.random.split(jax.random.fold_in(key, i))
        bound = 1.0 / (fin ** 0.5)
        w = jax.random.uniform(kw, (fout, fin), jnp.float32, -bound, bound)
        b = jax.random.uniform(kb, (fout, 1), jnp.float32, -bound, bound)
        params.extend([w, b])
    return tuple(params)


def reference_forward(x, params):
    w1, b1, w2, b2, w3, b3 = params
    h1 = jnp.maximum(x @ w1.T + b1[:, 0], 0.0)
    h2 = jnp.maximum(h1 @ w2.T + b2[:, 0], 0.0)
    return h2 @ w3.T + b3[:, 0]


if __name__ == "__main__":
    key = jax.random.PRNGKey(0)
    params = init_params(key)

    # Small batch of scalar states (state_dim = 1, as implied by fc1 = Linear(1, 24)).
    B = 8
    x = jax.random.normal(jax.random.fold_in(key, 100), (B, 1), jnp.float32)

    out = policy_network_forward(x, params)
    out = jax.block_until_ready(out)

    ref = reference_forward(x, params)
    assert out.shape == (B, 3), out.shape
    assert jnp.allclose(out, ref, atol=1e-5, rtol=1e-5), (out, ref)

    print("KERNEL_OK")
</pallas_src>

<mosaic_0001>
module attributes {stable_mosaic.version = 11 : i64} {
  func.func @mlp_kernel(%arg0: i32, %arg1: memref<1x128xf32, #tpu.memory_space<vmem>>, %arg2: memref<24x1xf32, #tpu.memory_space<vmem>>, %arg3: memref<24x1xf32, #tpu.memory_space<vmem>>, %arg4: memref<12x24xf32, #tpu.memory_space<vmem>>, %arg5: memref<12x1xf32, #tpu.memory_space<vmem>>, %arg6: memref<3x12xf32, #tpu.memory_space<vmem>>, %arg7: memref<3x1xf32, #tpu.memory_space<vmem>>, %arg8: memref<3x128xf32, #tpu.memory_space<vmem>>) attributes {dimension_semantics = [#tpu.dimension_semantics<parallel>], iteration_bounds = array<i64: 1>, scalar_prefetch = 0 : i64, scratch_operands = 0 : i64, tpu.core_type = #tpu.core_type<tc>, window_params = [{transform_indices = @transform_0, window_bounds = array<i64: 1, 128>}, {pipeline_mode = #tpu.pipeline_mode<synchronous>, transform_indices = @transform_1, window_bounds = array<i64: 24, 1>}, {pipeline_mode = #tpu.pipeline_mode<synchronous>, transform_indices = @transform_2, window_bounds = array<i64: 24, 1>}, {pipeline_mode = #tpu.pipeline_mode<synchronous>, transform_indices = @transform_3, window_bounds = array<i64: 12, 24>}, {pipeline_mode = #tpu.pipeline_mode<synchronous>, transform_indices = @transform_4, window_bounds = array<i64: 12, 1>}, {pipeline_mode = #tpu.pipeline_mode<synchronous>, transform_indices = @transform_5, window_bounds = array<i64: 3, 12>}, {pipeline_mode = #tpu.pipeline_mode<synchronous>, transform_indices = @transform_6, window_bounds = array<i64: 3, 1>}, {transform_indices = @transform_7, window_bounds = array<i64: 3, 128>}]} {
    %c0 = arith.constant 0 : index
    %c0_0 = arith.constant 0 : index
    %0 = vector.load %arg1[%c0, %c0_0] : memref<1x128xf32, #tpu.memory_space<vmem>>, vector<1x128xf32>
    %c0_1 = arith.constant 0 : index
    %c0_2 = arith.constant 0 : index
    %1 = vector.load %arg2[%c0_1, %c0_2] : memref<24x1xf32, #tpu.memory_space<vmem>>, vector<24x1xf32>
    %2 = vector.broadcast %1 : vector<24x1xf32> to vector<24x128xf32>
    %3 = vector.broadcast %0 : vector<1x128xf32> to vector<24x128xf32>
    %4 = arith.mulf %2, %3 : vector<24x128xf32>
    %c0_3 = arith.constant 0 : index
    %c0_4 = arith.constant 0 : index
    %5 = vector.load %arg3[%c0_3, %c0_4] : memref<24x1xf32, #tpu.memory_space<vmem>>, vector<24x1xf32>
    %6 = vector.broadcast %5 : vector<24x1xf32> to vector<24x128xf32>
    %7 = arith.addf %4, %6 : vector<24x128xf32>
    %cst = arith.constant 0.000000e+00 : f32
    %8 = vector.broadcast %cst : f32 to vector<24x128xf32>
    %9 = arith.maximumf %7, %8 : vector<24x128xf32>
    %c0_5 = arith.constant 0 : index
    %c0_6 = arith.constant 0 : index
    %10 = vector.load %arg4[%c0_5, %c0_6] : memref<12x24xf32, #tpu.memory_space<vmem>>, vector<12x24xf32>
    %cst_7 = arith.constant dense<0.000000e+00> : vector<12x128xf32>
    %11 = tpu.matmul %10, %9, %cst_7 {dimension_numbers = #tpu.dot_dimension_numbers<[1], [0], [0], [1], [0, 0, 1, 1], [], []>} : vector<12x24xf32>, vector<24x128xf32>, vector<12x128xf32> -> vector<12x128xf32>
    %c0_8 = arith.constant 0 : index
    %c0_9 = arith.constant 0 : index
    %12 = vector.load %arg5[%c0_8, %c0_9] : memref<12x1xf32, #tpu.memory_space<vmem>>, vector<12x1xf32>
    %13 = vector.broadcast %12 : vector<12x1xf32> to vector<12x128xf32>
    %14 = arith.addf %11, %13 : vector<12x128xf32>
    %cst_10 = arith.constant 0.000000e+00 : f32
    %15 = vector.broadcast %cst_10 : f32 to vector<12x128xf32>
    %16 = arith.maximumf %14, %15 : vector<12x128xf32>
    %c0_11 = arith.constant 0 : index
    %c0_12 = arith.constant 0 : index
    %17 = vector.load %arg6[%c0_11, %c0_12] : memref<3x12xf32, #tpu.memory_space<vmem>>, vector<3x12xf32>
    %cst_13 = arith.constant dense<0.000000e+00> : vector<3x128xf32>
    %18 = tpu.matmul %17, %16, %cst_13 {dimension_numbers = #tpu.dot_dimension_numbers<[1], [0], [0], [1], [0, 0, 1, 1], [], []>} : vector<3x12xf32>, vector<12x128xf32>, vector<3x128xf32> -> vector<3x128xf32>
    %c0_14 = arith.constant 0 : index
    %c0_15 = arith.constant 0 : index
    %19 = vector.load %arg7[%c0_14, %c0_15] : memref<3x1xf32, #tpu.memory_space<vmem>>, vector<3x1xf32>
    %20 = vector.broadcast %19 : vector<3x1xf32> to vector<3x128xf32>
    %21 = arith.addf %18, %20 : vector<3x128xf32>
    %c0_16 = arith.constant 0 : index
    %c0_17 = arith.constant 0 : index
    %22 = vector.load %arg8[%c0_16, %c0_17] : memref<3x128xf32, #tpu.memory_space<vmem>>, vector<3x128xf32>
    tpu.vector_store %arg8[%c0_16, %c0_17], %21 {strides = array<i32>} : memref<3x128xf32, #tpu.memory_space<vmem>>, vector<3x128xf32>,
    return
  }
  func.func @transform_0(%arg0: i32) -> (i32, i32) {
    %c0_i32 = arith.constant 0 : i32
    %c0_i32_0 = arith.constant 0 : i32
    return %c0_i32, %arg0 : i32, i32
  }
  func.func @transform_1(%arg0: i32) -> (i32, i32) {
    %c0_i32 = arith.constant 0 : i32
    %c0_i32_0 = arith.constant 0 : i32
    %c0_i32_1 = arith.constant 0 : i32
    return %c0_i32, %c0_i32_0 : i32, i32
  }
  func.func @transform_2(%arg0: i32) -> (i32, i32) {
    %c0_i32 = arith.constant 0 : i32
    %c0_i32_0 = arith.constant 0 : i32
    %c0_i32_1 = arith.constant 0 : i32
    return %c0_i32, %c0_i32_0 : i32, i32
  }
  func.func @transform_3(%arg0: i32) -> (i32, i32) {
    %c0_i32 = arith.constant 0 : i32
    %c0_i32_0 = arith.constant 0 : i32
    %c0_i32_1 = arith.constant 0 : i32
    return %c0_i32, %c0_i32_0 : i32, i32
  }
  func.func @transform_4(%arg0: i32) -> (i32, i32) {
    %c0_i32 = arith.constant 0 : i32
    %c0_i32_0 = arith.constant 0 : i32
    %c0_i32_1 = arith.constant 0 : i32
    return %c0_i32, %c0_i32_0 : i32, i32
  }
  func.func @transform_5(%arg0: i32) -> (i32, i32) {
    %c0_i32 = arith.constant 0 : i32
    %c0_i32_0 = arith.constant 0 : i32
    %c0_i32_1 = arith.constant 0 : i32
    return %c0_i32, %c0_i32_0 : i32, i32
  }
  func.func @transform_6(%arg0: i32) -> (i32, i32) {
    %c0_i32 = arith.constant 0 : i32
    %c0_i32_0 = arith.constant 0 : i32
    %c0_i32_1 = arith.constant 0 : i32
    return %c0_i32, %c0_i32_0 : i32, i32
  }
  func.func @transform_7(%arg0: i32) -> (i32, i32) {
    %c0_i32 = arith.constant 0 : i32
    %c0_i32_0 = arith.constant 0 : i32
    return %c0_i32, %arg0 : i32, i32
  }
}

</mosaic_0001>

<bundles_post_ra>
// kernel: tpu_custom_call.1
= control target key start
LH: loop header
LB: loop body
LE: loop exit
PB: predicated region body
PF: predicated region fallthrough
CT: control target
= control target key end

     0   :  { %v346_v2 = vmov 0   ;;  %s445_s0 = inlined_call_operand.vmem [shape: f32[1,128], index: 0, kind: input, shape index: {}]   ;;  %s446_s1 = inlined_call_operand.vmem [shape: f32[24,1], index: 1, kind: input, shape index: {}]   ;;  %s447_s2 = inlined_call_operand.vmem [shape: f32[24,1], index: 2, kind: input, shape index: {}]   ;;  %s448_s3 = inlined_call_operand.vmem [shape: f32[12,24], index: 3, kind: input, shape index: {}]   ;;  %s449_s4 = inlined_call_operand.vmem [shape: f32[12,1], index: 4, kind: input, shape index: {}]   ;;  %s450_s5 = inlined_call_operand.vmem [shape: f32[3,12], index: 5, kind: input, shape index: {}]   ;;  %s451_s6 = inlined_call_operand.vmem [shape: f32[3,1], index: 6, kind: input, shape index: {}]   ;;  %s452_s7 = inlined_call_operand.hbm [shape: f32[3,128], index: 7, kind: output, shape index: {}]  }
   0x1   :  { %v55_v0 = vld [vmem:[%s447_s2] sm:$0xff]  ;;  %321 = vset.pattern.permute.xlu1 %v346_v2  ;;  %320 = vset.pattern.permute.xlu0 %v346_v2  ;;  %v56_v3 = vld [vmem:[%s447_s2 + $0x8] sm:$0xff] }
   0x2   :  { %v28_v1 = vld [vmem:[%s446_s1] sm:$0xff]  ;;  %60 = vperm.xlu1 %321, %v55_v0   ;;  %v29_v4 = vld [vmem:[%s446_s1 + $0x8] sm:$0xff] }
   0x3   :  { %33 = vperm.xlu0 %320, %v28_v1  }
   0x4   :  { %12 = vsyncpa [#allocation3], 0  ;;  %v57_v5 = vld [vmem:[%s447_s2 + $0x10] sm:$0xff]  ;;  %v82_v7 = vld [vmem:[%s449_s4 + $0x8] sm:$0xf]  ;;  %vm93_vm0 = vcmask 195584  }
   0x5   :  { %v30_v6 = vld [vmem:[%s446_s1 + $0x10] sm:$0xff]  ;;  %v81_v8 = vld [vmem:[%s449_s4] sm:$0xff]  ;;  %v80_v28 = vld [vmem:[%s448_s3 + $0x8] sm:$0xf]  ;;  %v347_v29 = vmov 0.0|0.0   ;;  %vm348_vm1 = vmmov 0  }
   0x6   :  { %65 = vperm.xlu1 %321, %v56_v3   ;;  %v178_v9 = vld [vmem:[%s451_s6] sm:$0x7]  ;;  %310 = vmatprep.subr.bf16.mxu1 %v347_v29  ;;  %v349_v30 = vmov 0.0   ;;  %vm188_vm2 = vcmask 1043456   ;;  %vm350_vm3 = vmmov 1   ;;  %vm184_vm5 = vcmask 97280  }
   0x7   :  { %38 = vperm.xlu0 %320, %v29_v4   ;;  %v79_v10 = vld [vmem:[%s448_s3] sm:$0xff]  ;;  %303 = vmatprep.mubr.msk.f32.mxu1 %vm348_vm1, %v349_v30  ;;  %vm312_vm4 = vmpackc.low %vm188_vm2, %vm350_vm3  ;;  %s351_s21 = smov [#allocation2]  }
   0x8   :  { %296 = vmatprep.mubr.msk.f32.mxu0 %vm93_vm0, %v79_v10  ;;  %v277_v11 = vld [vmem:[%s445_s0] ss:$0 sm:$0xff]  ;;  %s269_s22 = sshll.u32 %s351_s21, 4  ;;  %s270_s22 = int_to_ptr.vmem [resolvable:$true] %s269_s22 }
   0x9   :  { %v177_v40 = vld [vmem:[%s450_s5] sm:$0x7]  ;;  %s322_s23 = scalar_lea.vmem %s270_s22, 64  ;;  %p327_p1 = scmp.lt.s32.totalorder %s270_s22, %s270_s22 }
   0xa   :  { %70 = vperm.xlu1 %321, %v57_v5   ;;  %p323_p0 = scmp.ne.s32.totalorder %s270_s22, %s322_s23  ;;  %p328_p2 = scmp.lt.s32.totalorder %s322_s23, %s322_s23 }
   0xb   :  { %43 = vperm.xlu0 %320, %v30_v6  }
   0xc   :  { %p329_p3 = por %p328_p2, %p327_p1 }
   0xe   :  { %90 = vperm.xlu1 %321, %v82_v7   ;;  %p330_p4 = pnand %p329_p3, %p323_p0 }
   0xf   :  { %85 = vperm.xlu0 %320, %v81_v8  }
  0x13   :  { %181 = vperm.xlu0 %320, %v178_v9  }
  0x81   :  { %v61_v12 = vpop.permute.xlu1 %60 }
  0x82   :  { %v34_v13 = vpop.permute.xlu0 %33 }
  0x83   :  { %v52_v14 = vmul.f32 %v277_v11, %v34_v13 }
  0x85   :  { %v66_v15 = vpop.permute.xlu1 %65  ;;  %v73_v17 = vadd.f32 %v61_v12, %v52_v14 }
  0x86   :  { %v39_v16 = vpop.permute.xlu0 %38 }
  0x87   :  { %v53_v18 = vmul.f32 %v277_v11, %v39_v16  ;;  %v76_v21 = vmax.f32 %v73_v17, 0.0 }
  0x89   :  { %v74_v19 = vadd.f32 %v66_v15, %v53_v18  ;;  %v71_v24 = vpop.permute.xlu1 %70 }
  0x8a   :  { %v44_v20 = vpop.permute.xlu0 %43 }
  0x8b   :  { %v77_v22 = vmax.f32 %v74_v19, 0.0  ;;  %v54_v23 = vmul.f32 %v277_v11, %v44_v20 }
  0x8d   :  { %v75_v25 = vadd.f32 %v71_v24, %v54_v23  ;;  %v306_v26 = vpack.c.bf16 %v77_v22, %v76_v21  ;;  %v91_v31 = vpop.permute.xlu1 %90 }
  0x8e   :  { %v86_v33 = vpop.permute.xlu0 %85 }
  0x8f   :  { %v78_v27 = vmax.f32 %v75_v25, 0.0  ;;  %307 = vmatprep.subr.bf16.mxu0 %v306_v26 }
  0x90   :  { %309 = vmatpush3.bf16.msra.mxu0 %v306_v26 }
  0x91   :  { %294 = vmatprep.subr.mxu0 %v78_v27 }
  0x92   :  { %v182_v41 = vpop.permute.xlu0 %181 }
  0x94   :  { %295 = vmatpush3.msra.mxu0 %v78_v27 }
  0x95   :  { %297 = vmatmul.mubr.msk.f32.vlgmr.msra.gmra.mrb[0].mxu0 %vm93_vm0, %v80_v28 }
 0x168   :  { %v298_v32 = vpop.f32.mrb[0].mxu0 }
 0x169   :  { %v172_v34 = vadd.f32 %v298_v32, %v91_v31  ;;  %v166_v35 = vpop.f32.mrb[1].mxu0 }
 0x16a   :  { %v167_v36 = vadd.f32 %v166_v35, %v86_v33 }
 0x16b   :  { %v176_v37 = vmax.f32 %v172_v34, 0.0 }
 0x16c   :  { %v175_v38 = vmax.f32 %v167_v36, 0.0 }
 0x16e   :  { %v311_v39 = vpack.c.bf16 %v176_v37, %v175_v38 }
 0x170   :  { %313 = vmatpush3.bf16.msk.msra.mxu1 %vm312_vm4, %v311_v39 }
 0x173   :  { %304 = vmatmul.mubr.msk.f32.vlgmr.msra.gmra.mrb[0].mxu1 %vm184_vm5, %v177_v40 }
 0x246   :  { %v258_v42 = vpop.f32.mrb[0].mxu1 }
 0x247   :  { %v259_v43 = vadd.f32 %v258_v42, %v182_v41  ;;  %v305_v44 = vpop.f32.mrb[1].mxu1 }
 0x249   :  { %262 = vst [vmem:[#allocation2] sm:$0x7] %v259_v43 }
 0x24a   :  { %333 = shalt.err (!%p330_p4)
}
 0x24b   :  { %s334_s5 = scalar_lea.hbm %s452_s7, 64 }
 0x24c   :  { %p335_p5 = scmp.ne.s32.totalorder %s452_s7, %s334_s5  ;;  %p338_p6 = scmp.lt.u32.totalorder %s334_s5, %s452_s7 }
 0x24e   :  { %p340_p7 = pnand %p338_p6, %p335_p5 }
 0x250   :  { %343 = shalt.err (!%p340_p7)
}
 0x251   :  { %272 = dma.vmem_to_hbm [thread:$0]  %s270_s22, 64, %s452_s7, [#allocation3]  }
 0x252   :  { %344 = dma.done.wait [#allocation3], 64  }
 0x253   :  { %345 = vsyncadd [#allocation3], 4294967232 }
 0x254   :  { %276 = vsyncpa [#allocation3], 1 }

</bundles_post_ra>
